<compile_context>
chip_gen: v7x
topology: tpu7x:2x2x1
jax: 0.10.0
libtpu: 0.0.40
codegen_flags: <defaults>
</compile_context>

<pallas_src>
import functools

import numpy as np
import jax
import jax.numpy as jnp
from jax import lax
from jax.experimental import pallas as pl
from jax.experimental.pallas import tpu as pltpu


def _round_up(x, m):
    return ((x + m - 1) // m) * m


def _ntxent_lse_kernel(e_ref, o_ref, m_ref, l_ref, *, two_n, t, tm, tk,
                       n_col_blocks):
    """Per-row log(sum_j exp(sim/t) - exp(1/t)) for one row block.

    e_ref : (2n_pad, c_pad) bf16 VMEM  resident embeddings (single-buffered)
    o_ref : (tm, 1)         f32  VMEM  per-row log-sum-exp (padded rows -> 0)
    m_ref : (tm, 1)         f32  VMEM  running row max  (online-LSE scratch)
    l_ref : (tm, 1)         f32  VMEM  running row sum  (online-LSE scratch)
    """
    i = pl.program_id(0)
    inv_t = np.float32(1.0 / t)

    # Row block, sliced from the resident operand (no duplicated input stream).
    row0 = pl.multiple_of(i * tm, tm)
    a = e_ref[pl.ds(row0, tm), :]                               # (tm, c_pad) bf16

    # Online (flash-style) log-sum-exp over column tiles: working set is
    # O(tm * tk), independent of 2n.
    m_ref[...] = jnp.full((tm, 1), -jnp.inf, dtype=jnp.float32)
    l_ref[...] = jnp.zeros((tm, 1), dtype=jnp.float32)
    col_iota = lax.broadcasted_iota(jnp.int32, (tm, tk), 1)     # hoisted

    @pl.loop(0, n_col_blocks)
    def _col(j):
        col0 = pl.multiple_of(j * tk, tk)
        b = e_ref[pl.ds(col0, tk), :]                           # (tk, c_pad) bf16
        # bf16 x bf16 -> f32 on the MXU, contracting the channel (last) axis of
        # both operands (A @ B^T without an explicit transpose).
        s = lax.dot_general(
            a, b,
            dimension_numbers=(((1,), (1,)), ((), ())),
            preferred_element_type=jnp.float32,
        ) * inv_t                                               # (tm, tk)
        # Padded E rows (>= 2n) are zero vectors; mask them to -inf BEFORE the
        # exp so they contribute exactly nothing.
        s = jnp.where(col_iota + j * tk < two_n, s, -jnp.inf)
        m_prev = m_ref[...]
        m_new = jnp.maximum(m_prev, jnp.max(s, axis=1, keepdims=True))
        l_ref[...] = (l_ref[...] * jnp.exp(m_prev - m_new)
                      + jnp.sum(jnp.exp(s - m_new), axis=1, keepdims=True))
        m_ref[...] = m_new

    # Finalize: log(sum_j exp(sim/t) - exp(1/t)) = m + log(l - exp(1/t - m)).
    # The exp(1/t) self-similarity subtraction matches the PyTorch reference
    # exactly (it assumes unit-norm embeddings, i.e. sim[i,i] == 1).
    # Padded rows are masked BEFORE the log so no NaNs are produced.
    m = m_ref[...]
    l = l_ref[...]
    row_ids = lax.broadcasted_iota(jnp.int32, (tm, 1), 0) + i * tm
    valid = row_ids < two_n
    inner = jnp.where(valid, l - jnp.exp(inv_t - m), 1.0)
    o_ref[...] = jnp.where(valid, m + jnp.log(inner), 0.0)


def contrastive_volume_loss(emb_0, emb_1, locations_0, locations_1, t):
    """JAX/Pallas equivalent of ContrastiveVolumeLoss.forward."""
    assert emb_0.shape == emb_1.shape, "Embedding tensors do not have the same shape"
    n = int(locations_0.shape[1])
    assert n == int(locations_1.shape[1])
    b, c, *volume_shape = emb_0.shape
    assert b == 1, "Batch size > 1 not yet implemented"
    d = len(volume_shape)
    v = int(np.prod(volume_shape))
    two_n = 2 * n

    # Exact integer flat indices (row-major strides over the spatial dims).
    strides = np.array(
        [int(np.prod(volume_shape[i + 1:])) for i in range(d)], dtype=np.int32)
    st = jnp.asarray(strides)
    loc0 = jnp.floor(locations_0[0].astype(jnp.float32)).astype(jnp.int32)   # (n, d)
    loc1 = jnp.floor(locations_1[0].astype(jnp.float32)).astype(jnp.int32)   # (n, d)
    ind_0 = jnp.sum(loc0 * st, axis=-1)                                      # (n,)
    ind_1 = jnp.sum(loc1 * st, axis=-1)                                      # (n,)

    # Gather the n sampled points per augmentation directly from the natural
    # (c, v) layout (no full-volume transpose).
    # TODO(synk): fuse this gather into the kernel (scalar-prefetch ind_0/ind_1
    # + per-point async DMA from HBM); for large volumes the XLA strided gather
    # dominates wall time, not the NT-Xent kernel.
    e0_cv = emb_0.reshape(c, v)
    e1_cv = emb_1.reshape(c, v)
    g0 = jnp.take(e0_cv, ind_0, axis=1).astype(jnp.float32)   # (c, n)
    g1 = jnp.take(e1_cv, ind_1, axis=1).astype(jnp.float32)   # (c, n)

    # Positive-pair similarities, analytically (f32, in the wrapper):
    #   sum_u sim[u, u+n] = sum(g0 * g1)
    pos = jnp.sum(g0 * g1)

    # Tile sizes: small problems get a single tight row block; large problems
    # use 256-row blocks with in-kernel column blocking (VMEM bounded on all of
    # v5e / v6e / v7x, so no per-generation tm table is needed).
    tm = min(256, _round_up(two_n, 8))
    two_n_pad = _round_up(two_n, tm)
    tk = tm
    for cand in (1024, 512):
        if two_n_pad % cand == 0:
            tk = cand
            break
    n_col_blocks = two_n_pad // tk
    c_pad = _round_up(c, 128)      # lane-dense K for the MXU

    # Lane-dense (2n_pad, c_pad) bf16 embedding matrix (zero padding is exact).
    E = jnp.concatenate([g0, g1], axis=1).T                     # (2n, c) -- tiny
    E = jnp.pad(E, ((0, two_n_pad - two_n), (0, c_pad - c)))
    E = E.astype(jnp.bfloat16)

    # VMEM budget: single-buffered resident E + row/col slices + (tm, tk)
    # temporaries + LSE scratch, plus headroom.
    e_bytes = two_n_pad * c_pad * 2
    temp_bytes = (tm + tk) * c_pad * 2 + 4 * tm * tk * 4 + 2 * tm * 128 * 4
    vmem_limit = int(min(max(e_bytes + temp_bytes + (8 << 20), 32 << 20),
                         128 << 20))

    kernel = functools.partial(
        _ntxent_lse_kernel, two_n=two_n, t=float(t), tm=tm, tk=tk,
        n_col_blocks=n_col_blocks)

    lse = pl.pallas_call(
        kernel,
        out_shape=jax.ShapeDtypeStruct((two_n_pad, 1), jnp.float32),
        grid=(two_n_pad // tm,),
        in_specs=[
            # E passed once, resident, single-buffered (constant index_map).
            pl.BlockSpec((two_n_pad, c_pad), lambda i: (0, 0),
                         pipeline_mode=pl.Buffered(1)),
        ],
        out_specs=pl.BlockSpec((tm, 1), lambda i: (i, 0)),
        scratch_shapes=[
            pltpu.VMEM((tm, 1), jnp.float32),   # running row max
            pltpu.VMEM((tm, 1), jnp.float32),   # running row sum
        ],
        compiler_params=pltpu.CompilerParams(
            dimension_semantics=("parallel",),  # rows independent -> 2 TCs on v7x
            vmem_limit_bytes=vmem_limit,
        ),
    )(E)

    # Finalize in the wrapper (keeps the row grid fully parallel):
    #   loss = (sum_w log(sum_e[w]) - 2 * sum_u sim[u, u+n] / t) / (2n)
    inv_t = np.float32(1.0 / t)
    return (jnp.sum(lse) - np.float32(2.0) * pos * inv_t) / np.float32(2 * n)


def _reference_loss(emb_0, emb_1, locations_0, locations_1, t):
    """Pure-JAX reference mirroring the PyTorch forward, for validation."""
    n = locations_0.shape[1]
    b, c, *volume_shape = emb_0.shape
    d = len(volume_shape)
    v = int(np.prod(volume_shape))
    e0 = jnp.transpose(emb_0.reshape(b, c, v), (0, 2, 1))
    e1 = jnp.transpose(emb_1.reshape(b, c, v), (0, 2, 1))
    strides = jnp.asarray(
        [np.prod(volume_shape[i + 1:]) for i in range(d)], dtype=jnp.float32)
    ind_0 = (jnp.floor(locations_0.astype(jnp.float32)) @ strides).astype(jnp.int32)[0]
    ind_1 = (jnp.floor(locations_1.astype(jnp.float32)) @ strides).astype(jnp.int32)[0]
    g0 = e0[:, ind_0, :]
    g1 = e1[:, ind_1, :]
    emb = jnp.concatenate([g0, g1], axis=1)                       # (1, 2n, c)
    sim = jnp.matmul(emb, jnp.swapaxes(emb, 2, 1))                # (1, 2n, 2n)
    exp = jnp.exp(sim / t)
    sum_e = jnp.sum(exp, axis=2) - np.exp(1.0 / t)
    u = jnp.arange(n)
    w = u + n
    e_uv = exp[0, u, w]
    loss = -jnp.sum(jnp.log(e_uv / sum_e[0, u]) + jnp.log(e_uv / sum_e[0, w]))
    return loss / (2 * n)


if __name__ == "__main__":
    key = jax.random.PRNGKey(0)
    k0, k1, k2, k3, k4, k5, k6 = jax.random.split(key, 7)

    # ---- Case 1: tiny problem (single row block, single column block) -------
    b, c, H, W = 1, 32, 16, 16
    n, t = 8, 1.0
    emb_0 = jax.random.normal(k0, (b, c, H, W), dtype=jnp.float32)
    emb_1 = jax.random.normal(k1, (b, c, H, W), dtype=jnp.float32)
    emb_0 = emb_0 / jnp.linalg.norm(emb_0, axis=1, keepdims=True)
    emb_1 = emb_1 / jnp.linalg.norm(emb_1, axis=1, keepdims=True)
    coords = jax.random.randint(k2, (b, n, 2), 0, min(H, W)).astype(jnp.float32)
    loss = jax.block_until_ready(
        contrastive_volume_loss(emb_0, emb_1, coords, coords, t))
    ref = jax.block_until_ready(_reference_loss(emb_0, emb_1, coords, coords, t))
    # bf16 MXU operands (f32 accumulation / exp / log) -> ~1e-4..1e-3 abs error.
    np.testing.assert_allclose(np.asarray(loss), np.asarray(ref),
                               rtol=2e-3, atol=2e-3)

    # ---- Case 2: multiple row blocks + multiple column blocks + padding -----
    b2, c2, H2, W2 = 1, 24, 32, 32
    n2, t2 = 300, 0.5
    e2_0 = jax.random.normal(k3, (b2, c2, H2, W2), dtype=jnp.float32)
    e2_1 = jax.random.normal(k4, (b2, c2, H2, W2), dtype=jnp.float32)
    e2_0 = e2_0 / jnp.linalg.norm(e2_0, axis=1, keepdims=True)
    e2_1 = e2_1 / jnp.linalg.norm(e2_1, axis=1, keepdims=True)
    loc2_0 = jax.random.randint(k5, (b2, n2, 2), 0, min(H2, W2)).astype(jnp.float32)
    loc2_1 = jax.random.randint(k6, (b2, n2, 2), 0, min(H2, W2)).astype(jnp.float32)
    loss2 = jax.block_until_ready(
        contrastive_volume_loss(e2_0, e2_1, loc2_0, loc2_1, t2))
    ref2 = jax.block_until_ready(_reference_loss(e2_0, e2_1, loc2_0, loc2_1, t2))
    np.testing.assert_allclose(np.asarray(loss2), np.asarray(ref2),
                               rtol=2e-3, atol=2e-3)

    print("KERNEL_OK")
</pallas_src>

<mosaic_0001>
module attributes {stable_mosaic.version = 11 : i64} {
  func.func @_ntxent_lse_kernel(%arg0: i32, %arg1: memref<16x128xbf16, #tpu.memory_space<vmem>>, %arg2: memref<16x1xf32, #tpu.memory_space<vmem>>, %arg3: memref<16x1xf32, #tpu.memory_space<vmem>>, %arg4: memref<16x1xf32, #tpu.memory_space<vmem>>) attributes {dimension_semantics = [#tpu.dimension_semantics<parallel>], iteration_bounds = array<i64: 1>, scalar_prefetch = 0 : i64, scratch_operands = 2 : i64, tpu.core_type = #tpu.core_type<tc>, window_params = [{pipeline_mode = #tpu.pipeline_mode<synchronous>, transform_indices = @transform_0, window_bounds = array<i64: 16, 128>}, {transform_indices = @transform_1, window_bounds = array<i64: 16, 1>}]} {
    %c16_i32 = arith.constant 16 : i32
    %0 = arith.muli %arg0, %c16_i32 : i32
    %1 = tpu.assume_multiple %0, 16 : i32
    %2 = arith.index_cast %1 : i32 to index
    %c0 = arith.constant 0 : index
    %3 = vector.load %arg1[%2, %c0] : memref<16x128xbf16, #tpu.memory_space<vmem>>, vector<16x128xbf16>
    %cst = arith.constant 0xFF800000 : f32
    %4 = vector.broadcast %cst : f32 to vector<16x1xf32>
    %c0_0 = arith.constant 0 : index
    %c0_1 = arith.constant 0 : index
    %5 = vector.load %arg3[%c0_0, %c0_1] : memref<16x1xf32, #tpu.memory_space<vmem>>, vector<16x1xf32>
    tpu.vector_store %arg3[%c0_0, %c0_1], %4 {strides = array<i32>} : memref<16x1xf32, #tpu.memory_space<vmem>>, vector<16x1xf32>,
    %cst_2 = arith.constant 0.000000e+00 : f32
    %6 = vector.broadcast %cst_2 : f32 to vector<16x1xf32>
    %c0_3 = arith.constant 0 : index
    %c0_4 = arith.constant 0 : index
    %7 = vector.load %arg4[%c0_3, %c0_4] : memref<16x1xf32, #tpu.memory_space<vmem>>, vector<16x1xf32>
    tpu.vector_store %arg4[%c0_3, %c0_4], %6 {strides = array<i32>} : memref<16x1xf32, #tpu.memory_space<vmem>>, vector<16x1xf32>,
    %8 = tpu.iota {dimensions = array<i32: 1>} : vector<16x16xi32>
    %c0_i32 = arith.constant 0 : i32
    %c1_i32 = arith.constant 1 : i32
    %9 = arith.muli %c0_i32, %c1_i32 : i32
    %c0_i32_5 = arith.constant 0 : i32
    %10 = arith.addi %c0_i32_5, %9 : i32
    %c16_i32_6 = arith.constant 16 : i32
    %11 = arith.muli %10, %c16_i32_6 : i32
    %12 = tpu.assume_multiple %11, 16 : i32
    %13 = arith.index_cast %12 : i32 to index
    %c0_7 = arith.constant 0 : index
    %14 = vector.load %arg1[%13, %c0_7] : memref<16x128xbf16, #tpu.memory_space<vmem>>, vector<16x128xbf16>
    %cst_8 = arith.constant dense<0.000000e+00> : vector<16x16xf32>
    %15 = tpu.matmul %3, %14, %cst_8 {dimension_numbers = #tpu.dot_dimension_numbers<[1], [1], [0], [0], [0, 0, 1, 0], [], []>} : vector<16x128xbf16>, vector<16x128xbf16>, vector<16x16xf32> -> vector<16x16xf32>
    %cst_9 = arith.constant 1.000000e+00 : f32
    %16 = vector.broadcast %cst_9 : f32 to vector<16x16xf32>
    %17 = arith.mulf %15, %16 : vector<16x16xf32>
    %c16_i32_10 = arith.constant 16 : i32
    %18 = arith.muli %10, %c16_i32_10 : i32
    %19 = vector.broadcast %18 : i32 to vector<16x16xi32>
    %20 = arith.addi %8, %19 : vector<16x16xi32>
    %c16_i32_11 = arith.constant 16 : i32
    %21 = vector.broadcast %c16_i32_11 : i32 to vector<16x16xi32>
    %22 = arith.cmpi slt, %20, %21 : vector<16x16xi32>
    %cst_12 = arith.constant 0xFF800000 : f32
    %23 = vector.broadcast %cst_12 : f32 to vector<16x16xf32>
    %24 = arith.select %22, %17, %23 : vector<16x16xi1>, vector<16x16xf32>
    %c0_13 = arith.constant 0 : index
    %c0_14 = arith.constant 0 : index
    %25 = vector.load %arg3[%c0_13, %c0_14] : memref<16x1xf32, #tpu.memory_space<vmem>>, vector<16x1xf32>
    %cst_15 = arith.constant dense<0xFF800000> : vector<16xf32>
    %26 = vector.multi_reduction <maximumf>, %24, %cst_15 [1] : vector<16x16xf32> to vector<16xf32>
    %27 = vector.shape_cast %26 : vector<16xf32> to vector<16x1xf32>
    %28 = arith.maximumf %25, %27 : vector<16x1xf32>
    %c0_16 = arith.constant 0 : index
    %c0_17 = arith.constant 0 : index
    %29 = vector.load %arg4[%c0_16, %c0_17] : memref<16x1xf32, #tpu.memory_space<vmem>>, vector<16x1xf32>
    %30 = arith.subf %25, %28 : vector<16x1xf32>
    %31 = math.exp %30 : vector<16x1xf32>
    %32 = arith.mulf %29, %31 : vector<16x1xf32>
    %33 = vector.broadcast %28 : vector<16x1xf32> to vector<16x16xf32>
    %34 = arith.subf %24, %33 : vector<16x16xf32>
    %35 = math.exp %34 : vector<16x16xf32>
    %cst_18 = arith.constant dense<0.000000e+00> : vector<16xf32>
    %36 = vector.multi_reduction <add>, %35, %cst_18 [1] : vector<16x16xf32> to vector<16xf32>
    %37 = vector.shape_cast %36 : vector<16xf32> to vector<16x1xf32>
    %38 = arith.addf %32, %37 : vector<16x1xf32>
    %c0_19 = arith.constant 0 : index
    %c0_20 = arith.constant 0 : index
    %39 = vector.load %arg4[%c0_19, %c0_20] : memref<16x1xf32, #tpu.memory_space<vmem>>, vector<16x1xf32>
    tpu.vector_store %arg4[%c0_19, %c0_20], %38 {strides = array<i32>} : memref<16x1xf32, #tpu.memory_space<vmem>>, vector<16x1xf32>,
    %c0_21 = arith.constant 0 : index
    %c0_22 = arith.constant 0 : index
    %40 = vector.load %arg3[%c0_21, %c0_22] : memref<16x1xf32, #tpu.memory_space<vmem>>, vector<16x1xf32>
    tpu.vector_store %arg3[%c0_21, %c0_22], %28 {strides = array<i32>} : memref<16x1xf32, #tpu.memory_space<vmem>>, vector<16x1xf32>,
    %c1_i32_23 = arith.constant 1 : i32
    %c0_24 = arith.constant 0 : index
    %c0_25 = arith.constant 0 : index
    %41 = vector.load %arg3[%c0_24, %c0_25] : memref<16x1xf32, #tpu.memory_space<vmem>>, vector<16x1xf32>
    %c0_26 = arith.constant 0 : index
    %c0_27 = arith.constant 0 : index
    %42 = vector.load %arg4[%c0_26, %c0_27] : memref<16x1xf32, #tpu.memory_space<vmem>>, vector<16x1xf32>
    %43 = tpu.iota {dimensions = array<i32: 0>} : vector<16x1xi32>
    %c16_i32_28 = arith.constant 16 : i32
    %44 = arith.muli %arg0, %c16_i32_28 : i32
    %45 = vector.broadcast %44 : i32 to vector<16x1xi32>
    %46 = arith.addi %43, %45 : vector<16x1xi32>
    %c16_i32_29 = arith.constant 16 : i32
    %47 = vector.broadcast %c16_i32_29 : i32 to vector<16x1xi32>
    %48 = arith.cmpi slt, %46, %47 : vector<16x1xi32>
    %cst_30 = arith.constant 1.000000e+00 : f32
    %49 = vector.broadcast %cst_30 : f32 to vector<16x1xf32>
    %50 = arith.subf %49, %41 : vector<16x1xf32>
    %51 = math.exp %50 : vector<16x1xf32>
    %52 = arith.subf %42, %51 : vector<16x1xf32>
    %cst_31 = arith.constant 1.000000e+00 : f32
    %53 = vector.broadcast %cst_31 : f32 to vector<16x1xf32>
    %54 = arith.select %48, %52, %53 : vector<16x1xi1>, vector<16x1xf32>
    %55 = math.log %54 : vector<16x1xf32>
    %56 = arith.addf %41, %55 : vector<16x1xf32>
    %cst_32 = arith.constant 0.000000e+00 : f32
    %57 = vector.broadcast %cst_32 : f32 to vector<16x1xf32>
    %58 = arith.select %48, %56, %57 : vector<16x1xi1>, vector<16x1xf32>
    %c0_33 = arith.constant 0 : index
    %c0_34 = arith.constant 0 : index
    %59 = vector.load %arg2[%c0_33, %c0_34] : memref<16x1xf32, #tpu.memory_space<vmem>>, vector<16x1xf32>
    tpu.vector_store %arg2[%c0_33, %c0_34], %58 {strides = array<i32>} : memref<16x1xf32, #tpu.memory_space<vmem>>, vector<16x1xf32>,
    return
  }
  func.func @transform_0(%arg0: i32) -> (i32, i32) {
    %c0_i32 = arith.constant 0 : i32
    %c0_i32_0 = arith.constant 0 : i32
    %c0_i32_1 = arith.constant 0 : i32
    return %c0_i32, %c0_i32_0 : i32, i32
  }
  func.func @transform_1(%arg0: i32) -> (i32, i32) {
    %c0_i32 = arith.constant 0 : i32
    %c0_i32_0 = arith.constant 0 : i32
    return %arg0, %c0_i32 : i32, i32
  }
}

</mosaic_0001>

<bundles_post_ra>
// kernel: tpu_custom_call.1
= control target key start
LH: loop header
LB: loop body
LE: loop exit
PB: predicated region body
PF: predicated region fallthrough
CT: control target
= control target key end

     0   :  { %6 = vsyncpa [#allocation5], 0  ;;  %s244_s6 = smov [#allocation4]   ;;  %s293_s0 = inlined_call_operand.hbm [shape: bf16[16,128], index: 0, kind: input, shape index: {}]   ;;  %s294_s1 = inlined_call_operand.vmem [shape: f32[16,1], index: 1, kind: output, shape index: {}]  }
   0x1   :  { %s12_s7 = sshll.u32 %s244_s6, 4  ;;  %s220_s10 = scalar_lea.hbm %s293_s0, 128  ;;  %s13_s7 = int_to_ptr.vmem [resolvable:$true] %s12_s7 }
   0x2   :  { %p221_p0 = scmp.ne.s32.totalorder %s293_s0, %s220_s10  ;;  %p224_p1 = scmp.lt.u32.totalorder %s220_s10, %s293_s0 }
   0x4   :  { %p226_p2 = pnand %p224_p1, %p221_p0 }
   0x6   :  { %229 = shalt.err (!%p226_p2)
}
   0x7   :  { %s230_s15 = scalar_lea.vmem %s13_s7, 128  ;;  %p235_p4 = scmp.lt.s32.totalorder %s13_s7, %s13_s7 }
   0x8   :  { %p231_p3 = scmp.ne.s32.totalorder %s13_s7, %s230_s15  ;;  %p236_p5 = scmp.lt.s32.totalorder %s230_s15, %s230_s15 }
   0xa   :  { %p237_p6 = por %p236_p5, %p235_p4 }
   0xc   :  { %p238_p7 = pnand %p237_p6, %p231_p3 }
   0xe   :  { %241 = shalt.err (!%p238_p7)
}
   0xf   :  { %s245_s16 = smov 64   ;;  %s246_s17 = smov 4  }
  0x10   :  { %18 = dma.hbm_to_vmem [thread:$0]  %s293_s0, 128, %s13_s7, [#allocation5], %s245_s16, %s245_s16, %s246_s17  }
  0x11   :  { %242 = dma.done.wait [#allocation5], 128  }
  0x12   :  { %243 = vsyncadd [#allocation5], 4294967168  ;;  %vm30_vm0 = vcmask 7168   ;;  %v247_v0 = vmov 0.0   ;;  %vm248_vm1 = vmmov 0   ;;  %v202_v1 = vld [vmem:[#allocation4] sm:$0xff]   ;;  %v35_v4 = vlaneseq }
  0x13   :  { %33 = vst.msk [vmem:[#allocation3] sm:$0xff] %vm30_vm0, %v247_v0  ;;  %34 = vst.msk [vmem:[#allocation3 + $0x8] sm:$0xff] %vm30_vm0, %v247_v0  ;;  %187 = vmatprep.subr.bf16.mxu0 %v247_v0  ;;  %189 = vmatprep.mubr.msk.bf16.mxu0 %vm248_vm1, %v247_v0  ;;  %v203_v2 = vld [vmem:[#allocation4] sm:$0xff]   ;;  %v249_v3 = vmov -inf   ;;  %vm97_vm3 = vcmask 130048   ;;  %v250_v14 = vmov 0  }
  0x14   :  { %188 = vmatpush3.bf16.xpose.msra.mxu0 %v202_v1  ;;  %31 = vst.msk [vmem:[#allocation2] sm:$0xff] %vm30_vm0, %v249_v3  ;;  %32 = vst.msk [vmem:[#allocation2 + $0x8] sm:$0xff] %vm30_vm0, %v249_v3  ;;  %v36_v5 = vand.u32 127, %v35_v4  ;;  %200 = vset.pattern.permute.xlu1 %v250_v14 }
  0x15   :  { %201 = vset.pattern.permute.xlu0 %v250_v14 }
  0x16   :  { %vm92_vm2 = vcmp.lt.s32.totalorder %v36_v5, 16 }
  0x1a   :  { %v106_v41 = vld [vmem:[#allocation3] sm:$0xff]  ;;  %v107_v46 = vld [vmem:[#allocation3 + $0x8] sm:$0xff] }
  0x1b   :  { %190 = vmatmul.mubr.bf16.vlgmr.msra.gmra.mrb[0].mxu0 %v203_v2  ;;  %v95_v15 = vld [vmem:[#allocation2] sm:$0xff]  ;;  %v96_v18 = vld [vmem:[#allocation2 + $0x8] sm:$0xff] }
  0xee   :  { %v85_v6 = vpop.f32.mrb[0].mxu0 }
  0xef   :  { %v93_v7 = vsel %vm92_vm2, %v85_v6, -inf  ;;  %v191_v8 = vpop.f32.mrb[1].mxu0 }
  0xf0   :  { %v88_v9 = vpop.f32.mrb[2].mxu0  ;;  %v98_v10 = vsel %vm97_vm3, %v93_v7, -inf }
  0xf1   :  { %v94_v11 = vsel %vm92_vm2, %v88_v9, -inf  ;;  %99 = vmax.xlane.f32.xlu0 %v98_v10  ;;  %v192_v12 = vpop.f32.mrb[3].mxu0 }
  0xf2   :  { %v101_v13 = vsel %vm97_vm3, %v94_v11, -inf }
  0xf5   :  { %102 = vmax.xlane.f32.xlu0 %v101_v13 }
 0x17e   :  { %v100_v16 = vpop.xlane.xlu0 %99 }
 0x17f   :  { %v104_v17 = vmax.f32 %v95_v15, %v100_v16 }
 0x181   :  { %v108_v19 = vsub.f32 %v95_v15, %v104_v17  ;;  %142 = vst.msk [vmem:[#allocation2] sm:$0xff] %vm30_vm0, %v104_v17  ;;  %118 = vperm.xlu1 %200, %v104_v17  }
 0x182   :  { %v103_v20 = vpop.xlane.xlu0 %102 }
 0x183   :  { %v105_v21 = vmax.f32 %v96_v18, %v103_v20  ;;  %v110_v33 = vmul.f32 1.442695, %v108_v19 }
 0x185   :  { %v109_v22 = vsub.f32 %v96_v18, %v105_v21  ;;  %143 = vst.msk [vmem:[#allocation2 + $0x8] sm:$0xff] %vm30_vm0, %v105_v21  ;;  %123 = vperm.xlu1 %200, %v105_v21  }
 0x187   :  { %v112_v34 = vmul.f32 1.442695, %v109_v22 }
 0x188   :  { %v144_v35 = vld [vmem:[#allocation2] sm:$0xff] }
 0x189   :  { %v156_v36 = vsub.f32 1.0, %v144_v35 }
 0x18b   :  { %v158_v39 = vmul.f32 1.442695, %v156_v36 }
 0x18c   :  { %v145_v37 = vld [vmem:[#allocation2 + $0x8] sm:$0xff] }
 0x18d   :  { %v157_v40 = vsub.f32 1.0, %v145_v37 }
 0x18f   :  { %v160_v44 = vmul.f32 1.442695, %v157_v40 }
 0x200   :  { %v119_v23 = vpop.permute.xlu1 %118 }
 0x201   :  { %v126_v24 = vsub.f32 %v93_v7, %v119_v23 }
 0x203   :  { %v128_v25 = vmul.f32 1.442695, %v126_v24 }
 0x204   :  { %v124_v26 = vpop.permute.xlu1 %123 }
 0x205   :  { %204 = vpow2.f32 %v128_v25  ;;  %v127_v27 = vsub.f32 %v94_v11, %v124_v26 }
 0x207   :  { %v130_v28 = vmul.f32 1.442695, %v127_v27 }
 0x209   :  { %206 = vpow2.f32 %v130_v28 }
 0x20a   :  { %208 = vpow2.f32 %v110_v33 }
 0x20b   :  { %210 = vpow2.f32 %v112_v34 }
 0x20c   :  { %212 = vpow2.f32 %v158_v39 }
 0x20d   :  { %214 = vpow2.f32 %v160_v44 }
 0x20f   :  { %v205_v29 = vpop.eup %204 }
 0x210   :  { %v132_v30 = vsel %vm97_vm3, %v205_v29, 0.0 }
 0x211   :  { %133 = vadd.xlane.f32.xlu0 %v132_v30 }
 0x213   :  { %v207_v31 = vpop.eup %206 }
 0x214   :  { %v135_v32 = vsel %vm97_vm3, %v207_v31, 0.0  ;;  %v209_v38 = vpop.eup %208 }
 0x215   :  { %136 = vadd.xlane.f32.xlu1 %v135_v32  ;;  %v114_v42 = vmul.f32 %v209_v38, %v106_v41  ;;  %v211_v43 = vpop.eup %210 }
 0x216   :  { %v115_v48 = vmul.f32 %v211_v43, %v107_v46  ;;  %v213_v51 = vpop.eup %212 }
 0x217   :  { %v215_v54 = vpop.eup %214 }
 0x29e   :  { %v134_v45 = vpop.xlane.xlu0 %133 }
 0x29f   :  { %v138_v47 = vadd.f32 %v134_v45, %v114_v42 }
 0x2a1   :  { %140 = vst.msk [vmem:[#allocation3] sm:$0xff] %vm30_vm0, %v138_v47 }
 0x2a2   :  { %v137_v49 = vpop.xlane.xlu1 %136 }
 0x2a3   :  { %v139_v50 = vadd.f32 %v137_v49, %v115_v48 }
 0x2a5   :  { %141 = vst.msk [vmem:[#allocation3 + $0x8] sm:$0xff] %vm30_vm0, %v139_v50 }
 0x2a8   :  { %v146_v52 = vld [vmem:[#allocation3] sm:$0xff] }
 0x2a9   :  { %v162_v53 = vsub.f32 %v146_v52, %v213_v51 }
 0x2ab   :  { %216 = vlog2.f32 %v162_v53 }
 0x2ac   :  { %v147_v55 = vld [vmem:[#allocation3 + $0x8] sm:$0xff] }
 0x2ad   :  { %v163_v56 = vsub.f32 %v147_v55, %v215_v54 }
 0x2af   :  { %218 = vlog2.f32 %v163_v56 }
 0x2b5   :  { %v217_v57 = vpop.eup %216 }
 0x2b6   :  { %v167_v58 = vmul.f32 0.6931472, %v217_v57 }
 0x2b8   :  { %v170_v59 = vadd.f32 %v167_v58, %v144_v35 }
 0x2b9   :  { %v219_v60 = vpop.eup %218 }
 0x2ba   :  { %174 = vst.msk [vmem:[%s294_s1] sm:$0xff] %vm30_vm0, %v170_v59  ;;  %v169_v61 = vmul.f32 0.6931472, %v219_v60 }
 0x2bc   :  { %v171_v62 = vadd.f32 %v169_v61, %v145_v37 }
 0x2be   :  { %175 = vst.msk [vmem:[%s294_s1 + $0x8] sm:$0xff] %vm30_vm0, %v171_v62 }
 0x2bf   :  { %180 = vsyncpa [#allocation5], 1 }

</bundles_post_ra>
